<compile_context>
chip_gen: v7x
topology: tpu7x:2x2x1
jax: 0.10.0
libtpu: 0.0.40
codegen_flags: <defaults>
</compile_context>

<pallas_src>
import jax
import jax.numpy as jnp
from jax.experimental import pallas as pl
from jax.experimental.pallas import tpu as pltpu

IN_DIM = 4      # state dim
HID_DIM = 128   # fc1 width
OUT_DIM = 2     # actions
OUT_PAD = 8     # fc2 output rows padded to one full sublane group
LANE = 128      # vreg lane width
CHUNK = 256     # lane chunk for the fc pipeline at large B_pad
MAX_B = 4096    # single-invocation limit


def policy_kernel(vb_ref, x_ref, wb1_ref, wb2_ref, out_ref, logits_ref):
    # vb_ref    : (1,) int32 in SMEM  -- number of valid batch lanes (runtime)
    # x_ref     : (4, B_pad)          -- features on sublanes, batch on lanes
    # wb1_ref   : (128, 5)            -- fc1.weight (out,in) | fc1.bias
    # wb2_ref   : (8, 129)            -- fc2.weight padded 2->8 rows | fc2.bias
    # out_ref   : (8, B_pad)          -- rows 0..1 are the real action probs
    # logits_ref: (8, B_pad) VMEM scratch (only used on the chunked path)
    b_pad = x_ref.shape[1]

    wb1 = wb1_ref[...]                                    # (128, 5)
    w1c = [wb1[:, k:k + 1] for k in range(IN_DIM)]        # 4 x (128, 1), hoisted
    b1 = wb1[:, IN_DIM:IN_DIM + 1]                        # (128, 1)
    wb2 = wb2_ref[...]                                    # (8, 129)
    w2 = wb2[:, 0:HID_DIM]                                # (8, 128)
    b2 = wb2[:, HID_DIM:HID_DIM + 1]                      # (8, 1)

    def fc_block(xc):
        # fc1 + ReLU on the VPU: K = 4 broadcast FMAs, bias folded into init.
        h = b1 + w1c[0] * xc[0:1, :]
        for k in range(1, IN_DIM):                        # static unroll, K = 4
            h = h + w1c[k] * xc[k:k + 1, :]
        h = jnp.maximum(h, 0.0)
        # fc2 on the MXU: (8,128) @ (128, chunk) -> (8, chunk), lane-dense N.
        return jnp.dot(w2, h, preferred_element_type=jnp.float32) + b2

    if b_pad <= CHUNK:
        # Small batch: straight-line body; the logits scratch is unused.
        logits = fc_block(x_ref[...])
    else:
        # Large batch: keep the (128, CHUNK) hidden activation inside the
        # vreg file instead of round-tripping a (128, B_pad) slab in VMEM.
        n_chunks = b_pad // CHUNK        # b_pad is a multiple of CHUNK here

        def body(c, carry):
            off = pl.multiple_of(c * CHUNK, CHUNK)
            logits_ref[:, pl.ds(off, CHUNK)] = fc_block(x_ref[:, pl.ds(off, CHUNK)])
            return carry

        jax.lax.fori_loop(0, n_chunks, body, 0)
        logits = logits_ref[...]

    # Mask padded batch lanes so they do not leak into the dim=0 softmax.
    valid_b = vb_ref[0]
    lane_idx = jax.lax.broadcasted_iota(jnp.int32, logits.shape, 1)
    logits = jnp.where(lane_idx < valid_b, logits, -jnp.inf)

    # Softmax over the batch axis (PyTorch softmax(dim=0) on (B, 2)) == lanes.
    m = jnp.max(logits, axis=1, keepdims=True)
    e = jnp.exp(logits - m)
    denom = jnp.sum(e, axis=1, keepdims=True)              # (8, 1)
    inv = pl.reciprocal(denom, approx=False)                # 8 divides, not (8, B_pad)
    out_ref[...] = e * inv


def prepare_params(w1, b1, w2, b2):
    """One-time packing of PyTorch-oriented params into the kernel layout.

    w1: (128, 4), b1: (128,), w2: (2, 128), b2: (2,)  -- PyTorch (out, in).
    Returns (wb1, wb2): wb1 = (128, 5) = w1|b1, wb2 = (8, 129) = w2_pad|b2_pad.
    Call once and reuse; do NOT re-pack per forward step.
    """
    wb1 = jnp.concatenate(
        [w1.astype(jnp.float32), b1.astype(jnp.float32).reshape(HID_DIM, 1)], axis=1)
    w2p = jnp.pad(w2.astype(jnp.float32), ((0, OUT_PAD - OUT_DIM), (0, 0)))
    b2p = jnp.pad(b2.astype(jnp.float32).reshape(OUT_DIM, 1),
                  ((0, OUT_PAD - OUT_DIM), (0, 0)))
    wb2 = jnp.concatenate([w2p, b2p], axis=1)
    return wb1, wb2


def _pad_batch(b):
    # <=128 -> one 128-lane bucket; beyond that, 256-lane buckets (full-width
    # MXU N tiles on v6e/v7x; the <=128 extra padded lanes are noise on v5e).
    if b <= LANE:
        return LANE
    return -(-b // CHUNK) * CHUNK


def policy_forward(x, wb1, wb2):
    """x: (B, 4) float32; (wb1, wb2) from prepare_params.

    Returns softmax(fc2(relu(fc1(x))), dim=0) of shape (B, 2).
    """
    B = x.shape[0]
    if B > MAX_B:
        # TODO(synk): for huge rollout batches, add a lane-axis grid with a
        # two-pass softmax (per-tile max/sum then normalize) so v7x can shard
        # the grid across both TensorCores.
        raise NotImplementedError(f"single-invocation kernel supports B <= {MAX_B}")

    b_pad = _pad_batch(B)
    # Per-call layout plumbing (cheap): batch -> lanes, zero-pad lanes.
    x_t = jnp.pad(x.T.astype(jnp.float32), ((0, 0), (0, b_pad - B)))   # (4, B_pad)
    valid_b = jnp.array([B], dtype=jnp.int32)                           # SMEM scalar

    vmem = pl.BlockSpec(memory_space=pltpu.MemorySpace.VMEM)
    smem = pl.BlockSpec(memory_space=pltpu.MemorySpace.SMEM)

    out_pad = pl.pallas_call(
        policy_kernel,
        out_shape=jax.ShapeDtypeStruct((OUT_PAD, b_pad), jnp.float32),
        in_specs=[smem, vmem, vmem, vmem],
        out_specs=vmem,
        scratch_shapes=[pltpu.VMEM((OUT_PAD, b_pad), jnp.float32)],
    )(valid_b, x_t, wb1, wb2)

    # Strip the action-row padding and the batch-lane padding, back to (B, 2).
    return out_pad[:OUT_DIM, :B].T


def init_params(key):
    """Deterministic init mimicking PyTorch Linear default U[-1/sqrt(fan_in), +].

    Weights are kept in PyTorch's native (out, in) orientation.
    """
    k1, k2, k3, k4 = jax.random.split(key, 4)
    bound1 = 1.0 / jnp.sqrt(jnp.float32(IN_DIM))
    bound2 = 1.0 / jnp.sqrt(jnp.float32(HID_DIM))
    w1 = jax.random.uniform(k1, (HID_DIM, IN_DIM), jnp.float32, -bound1, bound1)
    b1 = jax.random.uniform(k2, (HID_DIM,), jnp.float32, -bound1, bound1)
    w2 = jax.random.uniform(k3, (OUT_DIM, HID_DIM), jnp.float32, -bound2, bound2)
    b2 = jax.random.uniform(k4, (OUT_DIM,), jnp.float32, -bound2, bound2)
    return w1, b1, w2, b2


def reference_forward(x, w1, b1, w2, b2):
    hp = jax.lax.Precision.HIGHEST
    h = jnp.maximum(jnp.dot(x, w1.T, precision=hp) + b1, 0.0)
    logits = jnp.dot(h, w2.T, precision=hp) + b2
    return jax.nn.softmax(logits, axis=0)  # PyTorch dim=0


if __name__ == "__main__":
    key = jax.random.PRNGKey(0)
    kx, kx2, kp = jax.random.split(key, 3)

    w1, b1, w2, b2 = init_params(kp)
    wb1, wb2 = prepare_params(w1, b1, w2, b2)   # packed once, reused every step

    # Small (CartPole-like) batch.
    B = 8
    x = jax.random.normal(kx, (B, IN_DIM), jnp.float32)
    out = jax.block_until_ready(policy_forward(x, wb1, wb2))
    ref = reference_forward(x, w1, b1, w2, b2)
    assert out.shape == (B, OUT_DIM)
    assert jnp.allclose(out, ref, atol=1e-5, rtol=1e-5), "small-batch mismatch"
    # softmax over dim=0: each action column sums to 1 over the batch
    assert jnp.allclose(jnp.sum(out, axis=0), jnp.ones((OUT_DIM,)), atol=1e-5)

    # Larger batch exercising the lane-chunked path (b_pad = 768 -> 3 chunks).
    B2 = 600
    x2 = jax.random.normal(kx2, (B2, IN_DIM), jnp.float32)
    out2 = jax.block_until_ready(policy_forward(x2, wb1, wb2))
    ref2 = reference_forward(x2, w1, b1, w2, b2)
    assert out2.shape == (B2, OUT_DIM)
    assert jnp.allclose(out2, ref2, atol=1e-5, rtol=1e-5), "chunked-path mismatch"

    # TODO(synk): put_data / train_net (Adam REINFORCE update) and Categorical
    # action sampling are host-side training logic, not part of the forward kernel.
    print("KERNEL_OK")
</pallas_src>

<mosaic_0001>
module attributes {stable_mosaic.version = 11 : i64} {
  func.func @policy_kernel(%arg0: memref<1xi32, #tpu.memory_space<smem>>, %arg1: memref<4x128xf32, #tpu.memory_space<vmem>>, %arg2: memref<128x5xf32, #tpu.memory_space<vmem>>, %arg3: memref<8x129xf32, #tpu.memory_space<vmem>>, %arg4: memref<8x128xf32, #tpu.memory_space<vmem>>, %arg5: memref<8x128xf32, #tpu.memory_space<vmem>>) attributes {dimension_semantics = [], scalar_prefetch = 0 : i64, scratch_operands = 1 : i64, tpu.core_type = #tpu.core_type<tc>} {
    %c0 = arith.constant 0 : index
    %c0_0 = arith.constant 0 : index
    %0 = vector.load %arg2[%c0, %c0_0] : memref<128x5xf32, #tpu.memory_space<vmem>>, vector<128x5xf32>
    %1 = vector.extract_strided_slice %0 {offsets = [0, 0], sizes = [128, 1], strides = [1, 1]} : vector<128x5xf32> to vector<128x1xf32>
    %2 = vector.extract_strided_slice %0 {offsets = [0, 1], sizes = [128, 1], strides = [1, 1]} : vector<128x5xf32> to vector<128x1xf32>
    %3 = vector.extract_strided_slice %0 {offsets = [0, 2], sizes = [128, 1], strides = [1, 1]} : vector<128x5xf32> to vector<128x1xf32>
    %4 = vector.extract_strided_slice %0 {offsets = [0, 3], sizes = [128, 1], strides = [1, 1]} : vector<128x5xf32> to vector<128x1xf32>
    %5 = vector.extract_strided_slice %0 {offsets = [0, 4], sizes = [128, 1], strides = [1, 1]} : vector<128x5xf32> to vector<128x1xf32>
    %c0_1 = arith.constant 0 : index
    %c0_2 = arith.constant 0 : index
    %6 = vector.load %arg3[%c0_1, %c0_2] : memref<8x129xf32, #tpu.memory_space<vmem>>, vector<8x129xf32>
    %7 = vector.extract_strided_slice %6 {offsets = [0, 0], sizes = [8, 128], strides = [1, 1]} : vector<8x129xf32> to vector<8x128xf32>
    %8 = vector.extract_strided_slice %6 {offsets = [0, 128], sizes = [8, 1], strides = [1, 1]} : vector<8x129xf32> to vector<8x1xf32>
    %c0_3 = arith.constant 0 : index
    %c0_4 = arith.constant 0 : index
    %9 = vector.load %arg1[%c0_3, %c0_4] : memref<4x128xf32, #tpu.memory_space<vmem>>, vector<4x128xf32>
    %10 = vector.extract_strided_slice %9 {offsets = [0, 0], sizes = [1, 128], strides = [1, 1]} : vector<4x128xf32> to vector<1x128xf32>
    %11 = vector.broadcast %1 : vector<128x1xf32> to vector<128x128xf32>
    %12 = vector.broadcast %10 : vector<1x128xf32> to vector<128x128xf32>
    %13 = arith.mulf %11, %12 : vector<128x128xf32>
    %14 = vector.broadcast %5 : vector<128x1xf32> to vector<128x128xf32>
    %15 = arith.addf %14, %13 : vector<128x128xf32>
    %16 = vector.extract_strided_slice %9 {offsets = [1, 0], sizes = [1, 128], strides = [1, 1]} : vector<4x128xf32> to vector<1x128xf32>
    %17 = vector.broadcast %2 : vector<128x1xf32> to vector<128x128xf32>
    %18 = vector.broadcast %16 : vector<1x128xf32> to vector<128x128xf32>
    %19 = arith.mulf %17, %18 : vector<128x128xf32>
    %20 = arith.addf %15, %19 : vector<128x128xf32>
    %21 = vector.extract_strided_slice %9 {offsets = [2, 0], sizes = [1, 128], strides = [1, 1]} : vector<4x128xf32> to vector<1x128xf32>
    %22 = vector.broadcast %3 : vector<128x1xf32> to vector<128x128xf32>
    %23 = vector.broadcast %21 : vector<1x128xf32> to vector<128x128xf32>
    %24 = arith.mulf %22, %23 : vector<128x128xf32>
    %25 = arith.addf %20, %24 : vector<128x128xf32>
    %26 = vector.extract_strided_slice %9 {offsets = [3, 0], sizes = [1, 128], strides = [1, 1]} : vector<4x128xf32> to vector<1x128xf32>
    %27 = vector.broadcast %4 : vector<128x1xf32> to vector<128x128xf32>
    %28 = vector.broadcast %26 : vector<1x128xf32> to vector<128x128xf32>
    %29 = arith.mulf %27, %28 : vector<128x128xf32>
    %30 = arith.addf %25, %29 : vector<128x128xf32>
    %cst = arith.constant 0.000000e+00 : f32
    %31 = vector.broadcast %cst : f32 to vector<128x128xf32>
    %32 = arith.maximumf %30, %31 : vector<128x128xf32>
    %cst_5 = arith.constant dense<0.000000e+00> : vector<8x128xf32>
    %33 = tpu.matmul %7, %32, %cst_5 {dimension_numbers = #tpu.dot_dimension_numbers<[1], [0], [0], [1], [0, 0, 1, 1], [], []>} : vector<8x128xf32>, vector<128x128xf32>, vector<8x128xf32> -> vector<8x128xf32>
    %34 = vector.broadcast %8 : vector<8x1xf32> to vector<8x128xf32>
    %35 = arith.addf %33, %34 : vector<8x128xf32>
    %c0_6 = arith.constant 0 : index
    %36 = memref.load %arg0[%c0_6] : memref<1xi32, #tpu.memory_space<smem>>
    %37 = tpu.iota {dimensions = array<i32: 1>} : vector<8x128xi32>
    %38 = vector.broadcast %36 : i32 to vector<8x128xi32>
    %39 = arith.cmpi slt, %37, %38 : vector<8x128xi32>
    %cst_7 = arith.constant 0xFF800000 : f32
    %40 = vector.broadcast %cst_7 : f32 to vector<8x128xf32>
    %41 = arith.select %39, %35, %40 : vector<8x128xi1>, vector<8x128xf32>
    %cst_8 = arith.constant dense<0xFF800000> : vector<8xf32>
    %42 = vector.multi_reduction <maximumf>, %41, %cst_8 [1] : vector<8x128xf32> to vector<8xf32>
    %43 = vector.shape_cast %42 : vector<8xf32> to vector<8x1xf32>
    %44 = vector.broadcast %43 : vector<8x1xf32> to vector<8x128xf32>
    %45 = arith.subf %41, %44 : vector<8x128xf32>
    %46 = math.exp %45 : vector<8x128xf32>
    %cst_9 = arith.constant dense<0.000000e+00> : vector<8xf32>
    %47 = vector.multi_reduction <add>, %46, %cst_9 [1] : vector<8x128xf32> to vector<8xf32>
    %48 = vector.shape_cast %47 : vector<8xf32> to vector<8x1xf32>
    %49 = tpu.reciprocal %48 : vector<8x1xf32> -> vector<8x1xf32>
    %50 = vector.broadcast %49 : vector<8x1xf32> to vector<8x128xf32>
    %51 = arith.mulf %46, %50 : vector<8x128xf32>
    %c0_10 = arith.constant 0 : index
    %c0_11 = arith.constant 0 : index
    %52 = vector.load %arg4[%c0_10, %c0_11] : memref<8x128xf32, #tpu.memory_space<vmem>>, vector<8x128xf32>
    tpu.vector_store %arg4[%c0_10, %c0_11], %51 {strides = array<i32>} : memref<8x128xf32, #tpu.memory_space<vmem>>, vector<8x128xf32>,
    return
  }
}

</mosaic_0001>

<bundles_post_ra>
// kernel: tpu_custom_call.1
= control target key start
LH: loop header
LB: loop body
LE: loop exit
PB: predicated region body
PF: predicated region fallthrough
CT: control target
= control target key end

     0   :  { %v800_v2 = vmov 2   ;;  %v801_v3 = vmov 4   ;;  %s1197_s0 = inlined_call_operand.<no memory space> [shape: s32[1], index: 0, kind: input, shape index: {}]   ;;  %s1198_s1 = inlined_call_operand.vmem [shape: f32[4,128], index: 1, kind: input, shape index: {}]   ;;  %s1199_s2 = inlined_call_operand.vmem [shape: f32[128,5], index: 2, kind: input, shape index: {}]   ;;  %s1200_s3 = inlined_call_operand.vmem [shape: f32[8,129], index: 3, kind: input, shape index: {}]   ;;  %s1201_s4 = inlined_call_operand.hbm [shape: f32[8,128], index: 4, kind: output, shape index: {}]  }
   0x1   :  { %v837_v0 = vld [vmem:[%s1199_s2 + $0x18] sm:$0xff]  ;;  %v842_v1 = vld [vmem:[%s1199_s2] sm:$0xff]  ;;  %733 = vset.pattern.permute.xlu0 %v800_v2  ;;  %724 = vset.pattern.permute.xlu1 %v801_v3  ;;  %v20_v5 = vld [vmem:[%s1199_s2 + $0x8] sm:$0xff] }
   0x2   :  { %331 = vperm.xlu0 %733, %v837_v0   ;;  %139 = vperm.xlu1 %724, %v842_v1   ;;  %v851_v4 = vld [vmem:[%s1199_s2 + $0x20] sm:$0xff] }
   0x3   :  { %10 = vsyncpa [#allocation5], 0  ;;  %v802_v6 = vmov 3   ;;  %v803_v7 = vmov 1   ;;  %v21_v8 = vld [vmem:[%s1199_s2 + $0x10] sm:$0xff]  ;;  %v804_v9 = vmov 0   ;;  %v118_v47 = vlaneseq }
   0x4   :  { %v868_v10 = vld [vmem:[%s1199_s2 + $0x48] sm:$0xff]  ;;  %v875_v11 = vld [vmem:[%s1199_s2 + $0x50] sm:$0xff]  ;;  %v897_v13 = vld [vmem:[%s1199_s2 + $0x78] sm:$0xff]  ;;  %v805_v19 = vmov 0.0|0.0   ;;  %vm806_vm0 = vmmov 0  }
   0x5   :  { %v24_v12 = vld [vmem:[%s1199_s2 + $0x28] sm:$0xff]  ;;  %v26_v14 = vld [vmem:[%s1199_s2 + $0x38] sm:$0xff]  ;;  %v910_v15 = vld [vmem:[%s1199_s2 + $0x40] sm:$0xff]  ;;  %691 = vmatprep.subr.bf16.mxu0 %v805_v19  ;;  %v119_v50 = vshrl.u32 %v118_v47, 7 }
   0x6   :  { %335 = vperm.xlu0 %733, %v851_v4   ;;  %143 = vperm.xlu1 %724, %v20_v5   ;;  %v916_v16 = vld [vmem:[%s1199_s2 + $0x68] sm:$0xff]  ;;  %v923_v17 = vld [vmem:[%s1199_s2 + $0x70] sm:$0xff]  ;;  %v973_v26 = vld [vmem:[%s1199_s2 + $0x58] sm:$0xff] }
   0x7   :  { %v25_v18 = vld [vmem:[%s1199_s2 + $0x30] sm:$0xff]  ;;  %v1003_v40 = vld [vmem:[%s1199_s2 + $0x60] sm:$0xff]  ;;  %v120_v52 = vsub.s32 0, %v119_v50  ;;  %v284_v56 = vsub.s32 1, %v119_v50  ;;  %v384_v62 = vsub.s32 2, %v119_v50  ;;  %v484_v63 = vsub.s32 3, %v119_v50 }
   0x8   :  { %v37_v54 = vld [vmem:[%s1198_s1] sm:$0xf] }
   0x9   :  { %v1034_v57 = vrot.slane %v37_v54, %v120_v52  ;;  %v1042_v61 = vrot.slane %v37_v54, %v284_v56 }
   0xa   :  { %738 = vset.pattern.permute.xlu0 %v802_v6  ;;  %725 = vset.pattern.permute.xlu1 %v803_v7 }
   0xb   :  { %431 = vperm.xlu0 %738, %v837_v0   ;;  %223 = vperm.xlu1 %725, %v20_v5  }
   0xf   :  { %435 = vperm.xlu0 %738, %v851_v4   ;;  %726 = vset.pattern.permute.xlu1 %v804_v9 }
  0x10   :  { %50 = vperm.xlu1 %726, %v21_v8  }
  0x13   :  { %455 = vperm.xlu0 %738, %v868_v10  }
  0x14   :  { %727 = vset.pattern.permute.xlu1 %v800_v2 }
  0x15   :  { %319 = vperm.xlu1 %727, %v842_v1  }
  0x17   :  { %459 = vperm.xlu0 %738, %v875_v11  }
  0x19   :  { %323 = vperm.xlu1 %727, %v20_v5  }
  0x1b   :  { %757 = vset.pattern.permute.xlu0 %v804_v9 }
  0x1c   :  { %40 = vperm.xlu0 %757, %v842_v1  }
  0x1d   :  { %728 = vset.pattern.permute.xlu1 %v801_v3 }
  0x1e   :  { %151 = vperm.xlu1 %728, %v837_v0  }
  0x20   :  { %45 = vperm.xlu0 %757, %v20_v5  }
  0x22   :  { %729 = vset.pattern.permute.xlu1 %v803_v7 }
  0x23   :  { %227 = vperm.xlu1 %729, %v21_v8  }
  0x24   :  { %55 = vperm.xlu0 %757, %v837_v0  }
  0x27   :  { %730 = vset.pattern.permute.xlu1 %v802_v6 }
  0x28   :  { %60 = vperm.xlu0 %757, %v851_v4   ;;  %419 = vperm.xlu1 %730, %v842_v1  }
  0x2c   :  { %85 = vperm.xlu0 %757, %v868_v10   ;;  %423 = vperm.xlu1 %730, %v20_v5  }
  0x30   :  { %90 = vperm.xlu0 %757, %v875_v11   ;;  %731 = vset.pattern.permute.xlu1 %v804_v9 }
  0x31   :  { %65 = vperm.xlu1 %731, %v24_v12  }
  0x34   :  { %115 = vperm.xlu0 %757, %v897_v13  }
  0x35   :  { %732 = vset.pattern.permute.xlu1 %v800_v2 }
  0x36   :  { %327 = vperm.xlu1 %732, %v21_v8  }
  0x38   :  { %760 = vset.pattern.permute.xlu0 %v801_v3 }
  0x39   :  { %147 = vperm.xlu0 %760, %v21_v8  }
  0x3a   :  { %734 = vset.pattern.permute.xlu1 %v801_v3 }
  0x3b   :  { %155 = vperm.xlu1 %734, %v851_v4  }
  0x3d   :  { %167 = vperm.xlu0 %760, %v26_v14  }
  0x3f   :  { %159 = vperm.xlu1 %734, %v24_v12  }
  0x41   :  { %171 = vperm.xlu0 %760, %v910_v15  }
  0x43   :  { %735 = vset.pattern.permute.xlu1 %v803_v7 }
  0x44   :  { %239 = vperm.xlu1 %735, %v24_v12  }
  0x45   :  { %191 = vperm.xlu0 %760, %v916_v16  }
  0x48   :  { %736 = vset.pattern.permute.xlu1 %v802_v6 }
  0x49   :  { %195 = vperm.xlu0 %760, %v923_v17   ;;  %427 = vperm.xlu1 %736, %v21_v8  }
  0x4d   :  { %762 = vset.pattern.permute.xlu0 %v803_v7  ;;  %737 = vset.pattern.permute.xlu1 %v804_v9 }
  0x4e   :  { %219 = vperm.xlu0 %762, %v842_v1   ;;  %70 = vperm.xlu1 %737, %v25_v18  }
  0x52   :  { %231 = vperm.xlu0 %762, %v837_v0   ;;  %75 = vperm.xlu1 %737, %v26_v14  }
  0x56   :  { %235 = vperm.xlu0 %762, %v851_v4   ;;  %739 = vset.pattern.permute.xlu1 %v800_v2 }
  0x57   :  { %339 = vperm.xlu1 %739, %v24_v12  }
  0x5a   :  { %255 = vperm.xlu0 %762, %v868_v10  }
  0x5b   :  { %740 = vset.pattern.permute.xlu1 %v801_v3 }
  0x5c   :  { %163 = vperm.xlu1 %740, %v25_v18  }
  0x5e   :  { %259 = vperm.xlu0 %762, %v875_v11  }
  0x60   :  { %741 = vset.pattern.permute.xlu1 %v803_v7 }
  0x61   :  { %243 = vperm.xlu1 %741, %v25_v18  }
  0x62   :  { %279 = vperm.xlu0 %762, %v897_v13  }
  0x65   :  { %247 = vperm.xlu1 %741, %v26_v14  }
  0x66   :  { %765 = vset.pattern.permute.xlu0 %v800_v2 }
  0x67   :  { %355 = vperm.xlu0 %765, %v868_v10  }
  0x69   :  { %742 = vset.pattern.permute.xlu1 %v802_v6 }
  0x6a   :  { %439 = vperm.xlu1 %742, %v24_v12   ;;  %v1055_v12 = vrot.slane %v37_v54, %v484_v63 }
  0x6b   :  { %359 = vperm.xlu0 %765, %v875_v11  }
  0x6e   :  { %743 = vset.pattern.permute.xlu1 %v804_v9 }
  0x6f   :  { %80 = vperm.xlu1 %743, %v910_v15   ;;  %375 = vperm.xlu0 %765, %v923_v17  }
  0x73   :  { %744 = vset.pattern.permute.xlu1 %v800_v2  ;;  %769 = vset.pattern.permute.xlu0 %v802_v6 }
  0x74   :  { %343 = vperm.xlu1 %744, %v25_v18   ;;  %479 = vperm.xlu0 %769, %v897_v13  }
  0x78   :  { %347 = vperm.xlu1 %744, %v26_v14   ;;  %771 = vset.pattern.permute.xlu0 %v804_v9 }
  0x7c   :  { %745 = vset.pattern.permute.xlu1 %v801_v3 }
  0x7d   :  { %175 = vperm.xlu1 %745, %v868_v10  }
  0x81   :  { %746 = vset.pattern.permute.xlu1 %v803_v7  ;;  %v956_v20 = vpop.permute.xlu1 %139  ;;  %v958_v21 = vpop.permute.xlu0 %331 }
  0x82   :  { %251 = vperm.xlu1 %746, %v910_v15  }
  0x85   :  { %v961_v22 = vpop.permute.xlu1 %143  ;;  %v963_v23 = vpop.permute.xlu0 %335 }
  0x86   :  { %747 = vset.pattern.permute.xlu1 %v802_v6 }
  0x87   :  { %443 = vperm.xlu1 %747, %v25_v18  }
  0x8a   :  { %v966_v24 = vpop.permute.xlu1 %223  ;;  %v968_v25 = vpop.permute.xlu0 %431 }
  0x8b   :  { %447 = vperm.xlu1 %747, %v26_v14   ;;  %v287_v5 = vmul.f32 %v1042_v61, %v966_v24 }
  0x8e   :  { %v975_v27 = vpop.permute.xlu0 %435 }
  0x8f   :  { %748 = vset.pattern.permute.xlu1 %v804_v9  ;;  %v51_v28 = vpop.permute.xlu1 %50 }
  0x90   :  { %95 = vperm.xlu1 %748, %v973_v26   ;;  %v124_v8 = vmul.f32 %v1034_v57, %v51_v28 }
  0x92   :  { %v979_v29 = vpop.permute.xlu0 %455 }
  0x94   :  { %749 = vset.pattern.permute.xlu1 %v800_v2  ;;  %v982_v30 = vpop.permute.xlu1 %319 }
  0x95   :  { %351 = vperm.xlu1 %749, %v910_v15  }
  0x96   :  { %v985_v31 = vpop.permute.xlu0 %459 }
  0x98   :  { %v324_v32 = vpop.permute.xlu1 %323 }
  0x99   :  { %750 = vset.pattern.permute.xlu1 %v801_v3 }
  0x9a   :  { %179 = vperm.xlu1 %750, %v875_v11   ;;  %v1053_v11 = vrot.slane %v37_v54, %v384_v62 }
  0x9b   :  { %v41_v33 = vpop.permute.xlu0 %40 }
  0x9c   :  { %v122_v10 = vmul.f32 %v1034_v57, %v41_v33  ;;  %v387_v18 = vmul.f32 %v1053_v11, %v324_v32  ;;  %v389_v32 = vmul.f32 %v1053_v11, %v958_v21 }
  0x9d   :  { %v989_v34 = vpop.permute.xlu1 %151 }
  0x9e   :  { %183 = vperm.xlu1 %750, %v973_v26  }
  0x9f   :  { %v46_v35 = vpop.permute.xlu0 %45 }
  0xa0   :  { %v123_v58 = vmul.f32 %v1034_v57, %v46_v35 }
  0xa2   :  { %751 = vset.pattern.permute.xlu1 %v803_v7  ;;  %v228_v36 = vpop.permute.xlu1 %227  ;;  %v203_v0 = vadd.f32 %v961_v22, %v123_v58 }
  0xa3   :  { %v56_v37 = vpop.permute.xlu0 %55  ;;  %263 = vperm.xlu1 %751, %v973_v26   ;;  %v288_v28 = vmul.f32 %v1042_v61, %v228_v36 }
  0xa4   :  { %v303_v14 = vadd.f32 %v287_v5, %v203_v0  ;;  %v125_v22 = vmul.f32 %v1034_v57, %v56_v37  ;;  %v386_v37 = vmul.f32 %v1053_v11, %v982_v30 }
  0xa6   :  { %v205_v54 = vadd.f32 %v989_v34, %v125_v22  ;;  %v489_v34 = vmul.f32 %v1055_v12, %v968_v25  ;;  %v490_v25 = vmul.f32 %v1055_v12, %v975_v27 }
  0xa7   :  { %752 = vset.pattern.permute.xlu1 %v802_v6  ;;  %v995_v38 = vpop.permute.xlu1 %419  ;;  %v997_v39 = vpop.permute.xlu0 %60 }
  0xa8   :  { %451 = vperm.xlu1 %752, %v910_v15   ;;  %v126_v36 = vmul.f32 %v1034_v57, %v997_v39 }
  0xab   :  { %v424_v41 = vpop.permute.xlu1 %423  ;;  %v1005_v42 = vpop.permute.xlu0 %85 }
  0xac   :  { %753 = vset.pattern.permute.xlu1 %v804_v9  ;;  %v487_v35 = vmul.f32 %v1055_v12, %v424_v41 }
  0xad   :  { %100 = vperm.xlu1 %753, %v1003_v40  }
  0xaf   :  { %v1009_v43 = vpop.permute.xlu0 %90 }
  0xb0   :  { %v1011_v44 = vpop.permute.xlu1 %65 }
  0xb1   :  { %105 = vperm.xlu1 %753, %v916_v16  }
  0xb3   :  { %v1014_v45 = vpop.permute.xlu0 %115 }
  0xb5   :  { %754 = vset.pattern.permute.xlu1 %v800_v2  ;;  %v328_v46 = vpop.permute.xlu1 %327 }
  0xb6   :  { %363 = vperm.xlu1 %754, %v973_v26   ;;  %v388_v63 = vmul.f32 %v1053_v11, %v328_v46 }
  0xb8   :  { %v148_v48 = vpop.permute.xlu0 %147 }
  0xb9   :  { %v204_v15 = vadd.f32 %v148_v48, %v124_v8  ;;  %v403_v48 = vadd.f32 %v387_v18, %v303_v14  ;;  %v390_v8 = vmul.f32 %v1053_v11, %v963_v23 }
  0xba   :  { %755 = vset.pattern.permute.xlu1 %v801_v3  ;;  %v1019_v49 = vpop.permute.xlu1 %155 }
  0xbb   :  { %187 = vperm.xlu1 %755, %v1003_v40   ;;  %v304_v41 = vadd.f32 %v288_v28, %v204_v15  ;;  %v503_v56 = vadd.f32 %v487_v35, %v403_v48  ;;  %v206_v46 = vadd.f32 %v1019_v49, %v126_v36 }
  0xbc   :  { %v1023_v51 = vpop.permute.xlu0 %167 }
  0xbe   :  { %v1025_v53 = vpop.permute.xlu1 %159 }
  0xbf   :  { %756 = vset.pattern.permute.xlu1 %v803_v7 }
  0xc0   :  { %267 = vperm.xlu1 %756, %v1003_v40   ;;  %v1032_v55 = vpop.permute.xlu0 %171 }
  0xc3   :  { %v1037_v59 = vpop.permute.xlu1 %239 }
  0xc4   :  { %271 = vperm.xlu1 %756, %v916_v16   ;;  %v1040_v60 = vpop.permute.xlu0 %191 }
  0xc8   :  { %758 = vset.pattern.permute.xlu1 %v802_v6  ;;  %v428_v1 = vpop.permute.xlu1 %427  ;;  %v1046_v4 = vpop.permute.xlu0 %195 }
  0xc9   :  { %463 = vperm.xlu1 %758, %v973_v26   ;;  %v202_v26 = vadd.f32 %v956_v20, %v122_v10  ;;  %v486_v20 = vmul.f32 %v1055_v12, %v995_v38  ;;  %v488_v21 = vmul.f32 %v1055_v12, %v428_v1  ;;  %v404_v38 = vadd.f32 %v388_v63, %v304_v41 }
  0xca   :  { %v519_v10 = vmax.f32 %v503_v56, 0.0  ;;  %v127_v41 = vmul.f32 %v1034_v57, %v1011_v44 }
  0xcb   :  { %v504_v14 = vadd.f32 %v488_v21, %v404_v38 }
  0xcd   :  { %v220_v50 = vpop.permute.xlu0 %219  ;;  %759 = vset.pattern.permute.xlu1 %v804_v9  ;;  %v1061_v24 = vpop.permute.xlu1 %70 }
  0xce   :  { %v286_v33 = vmul.f32 %v1042_v61, %v220_v50  ;;  %110 = vperm.xlu1 %759, %v923_v17  }
  0xd0   :  { %v302_v52 = vadd.f32 %v286_v33, %v202_v26  ;;  %v520_v33 = vmax.f32 %v504_v14, 0.0 }
  0xd1   :  { %v232_v58 = vpop.permute.xlu0 %231  ;;  %v1076_v62 = vpop.permute.xlu1 %75 }
  0xd2   :  { %v402_v0 = vadd.f32 %v386_v37, %v302_v52  ;;  %v289_v30 = vmul.f32 %v1042_v61, %v232_v58  ;;  %761 = vset.pattern.permute.xlu1 %v800_v2  ;;  %v129_v14 = vmul.f32 %v1034_v57, %v1076_v62 }
  0xd3   :  { %367 = vperm.xlu1 %761, %v1003_v40  }
  0xd4   :  { %v305_v39 = vadd.f32 %v289_v30, %v205_v54  ;;  %v502_v5 = vadd.f32 %v486_v20, %v402_v0  ;;  %v207_v54 = vadd.f32 %v1025_v53, %v127_v41 }
  0xd5   :  { %v236_v1 = vpop.permute.xlu0 %235 }
  0xd6   :  { %v405_v15 = vadd.f32 %v389_v32, %v305_v39  ;;  %v290_v18 = vmul.f32 %v1042_v61, %v236_v1  ;;  %v340_v22 = vpop.permute.xlu1 %339  ;;  %v518_v35 = vmax.f32 %v502_v5, 0.0  ;;  %v128_v1 = vmul.f32 %v1034_v57, %v1061_v24 }
  0xd7   :  { %371 = vperm.xlu1 %761, %v916_v16   ;;  %v391_v20 = vmul.f32 %v1053_v11, %v340_v22 }
  0xd8   :  { %v306_v50 = vadd.f32 %v290_v18, %v206_v46  ;;  %v692_v26 = vpack.c.bf16 %v519_v10, %v518_v35  ;;  %v505_v28 = vadd.f32 %v489_v34, %v405_v15 }
  0xda   :  { %v406_v23 = vadd.f32 %v390_v8, %v306_v50  ;;  %693 = vmatpush3.bf16.msra.mxu0 %v692_v26  ;;  %v521_v48 = vmax.f32 %v505_v28, 0.0  ;;  %v807_v8 = vmov 0.0   ;;  %v209_v50 = vadd.f32 %v1023_v51, %v129_v14 }
  0xdb   :  { %763 = vset.pattern.permute.xlu1 %v801_v3  ;;  %v164_v49 = vpop.permute.xlu1 %163  ;;  %694 = vmatprep.subr.bf16.mxu0 %v805_v19  ;;  %v291_v3 = vmul.f32 %v1042_v61, %v1037_v59  ;;  %v132_v51 = vmul.f32 %v1034_v57, %v1009_v43 }
  0xdc   :  { %199 = vperm.xlu1 %763, %v897_v13   ;;  %v695_v32 = vpack.c.bf16 %v521_v48, %v520_v33  ;;  %v506_v37 = vadd.f32 %v490_v25, %v406_v23  ;;  %688 = vmatprep.mubr.msk.f32.mxu0 %vm806_vm0, %v807_v8  ;;  %v208_v22 = vadd.f32 %v164_v49, %v128_v1 }
  0xdd   :  { %v307_v36 = vadd.f32 %v291_v3, %v207_v54 }
  0xde   :  { %696 = vmatpush3.bf16.msra.mxu0 %v695_v32  ;;  %v522_v0 = vmax.f32 %v506_v37, 0.0 }
  0xdf   :  { %697 = vmatprep.subr.bf16.mxu0 %v805_v19  ;;  %v407_v58 = vadd.f32 %v391_v20, %v307_v36 }
  0xe0   :  { %764 = vset.pattern.permute.xlu1 %v803_v7  ;;  %v244_v27 = vpop.permute.xlu1 %243  ;;  %v256_v7 = vpop.permute.xlu0 %255 }
  0xe1   :  { %275 = vperm.xlu1 %764, %v923_v17   ;;  %v292_v15 = vmul.f32 %v1042_v61, %v244_v27 }
  0xe3   :  { %v308_v26 = vadd.f32 %v292_v15, %v208_v22 }
  0xe4   :  { %v248_v52 = vpop.permute.xlu1 %247  ;;  %v260_v53 = vpop.permute.xlu0 %259 }
  0xe5   :  { %766 = vset.pattern.permute.xlu1 %v802_v6  ;;  %v296_v36 = vmul.f32 %v1042_v61, %v260_v53 }
  0xe6   :  { %467 = vperm.xlu1 %766, %v1003_v40  }
  0xe9   :  { %v440_v56 = vpop.permute.xlu1 %439 }
  0xea   :  { %v491_v63 = vmul.f32 %v1055_v12, %v440_v56  ;;  %471 = vperm.xlu1 %766, %v916_v16   ;;  %v1115_v16 = vpop.permute.xlu0 %279 }
  0xec   :  { %v507_v44 = vadd.f32 %v491_v63, %v407_v58 }
  0xee   :  { %v523_v21 = vmax.f32 %v507_v44, 0.0  ;;  %767 = vset.pattern.permute.xlu1 %v800_v2  ;;  %v1109_v59 = vpop.permute.xlu1 %80  ;;  %v131_v2 = vmul.f32 %v1034_v57, %v1005_v42  ;;  %v356_v38 = vpop.permute.xlu0 %355 }
  0xef   :  { %379 = vperm.xlu1 %767, %v897_v13   ;;  %v295_v13 = vmul.f32 %v1042_v61, %v256_v7 }
  0xf0   :  { %v698_v30 = vpack.c.bf16 %v523_v21, %v522_v0  ;;  %v496_v21 = vmul.f32 %v1055_v12, %v985_v31 }
  0xf2   :  { %699 = vmatpush3.bf16.msra.mxu0 %v698_v30  ;;  %v360_v20 = vpop.permute.xlu0 %359  ;;  %v130_v30 = vmul.f32 %v1034_v57, %v1109_v59 }
  0xf3   :  { %768 = vset.pattern.permute.xlu1 %v802_v6  ;;  %v344_v40 = vpop.permute.xlu1 %343  ;;  %700 = vmatprep.subr.bf16.mxu0 %v805_v19  ;;  %v395_v6 = vmul.f32 %v1053_v11, %v356_v38  ;;  %v396_v58 = vmul.f32 %v1053_v11, %v360_v20 }
  0xf4   :  { %475 = vperm.xlu1 %768, %v923_v17   ;;  %v495_v17 = vmul.f32 %v1055_v12, %v979_v29  ;;  %v293_v29 = vmul.f32 %v1042_v61, %v248_v52  ;;  %v392_v35 = vmul.f32 %v1053_v11, %v344_v40 }
  0xf6   :  { %v309_v24 = vadd.f32 %v293_v29, %v209_v50  ;;  %v408_v23 = vadd.f32 %v392_v35, %v308_v26 }
  0xf7   :  { %v348_v34 = vpop.permute.xlu1 %347 }
  0xf8   :  { %770 = vset.pattern.permute.xlu1 %v804_v9  ;;  %v36_v9 = vld [vmem:[%s1200_s3 + $0x8] sm:$0xff]  ;;  %v393_v28 = vmul.f32 %v1053_v11, %v348_v34 }
  0xf9   :  { %536 = vperm.xlu1 %770, %v36_v9  }
  0xfa   :  { %v409_v62 = vadd.f32 %v393_v28, %v309_v24 }
  0xfc   :  { %v176_v39 = vpop.permute.xlu1 %175 }
  0xfd   :  { %v211_v5 = vadd.f32 %v176_v39, %v131_v2  ;;  %v210_v2 = vadd.f32 %v1032_v55, %v130_v30 }
  0xff   :  { %v311_v10 = vadd.f32 %v295_v13, %v211_v5 }
 0x101   :  { %v411_v42 = vadd.f32 %v395_v6, %v311_v10  ;;  %v252_v46 = vpop.permute.xlu1 %251 }
 0x102   :  { %v294_v34 = vmul.f32 %v1042_v61, %v252_v46 }
 0x103   :  { %v511_v18 = vadd.f32 %v495_v17, %v411_v42 }
 0x104   :  { %v310_v38 = vadd.f32 %v294_v34, %v210_v2 }
 0x105   :  { %v527_v8 = vmax.f32 %v511_v18, 0.0 }
 0x106   :  { %v444_v25 = vpop.permute.xlu1 %443 }
 0x107   :  { %v492_v33 = vmul.f32 %v1055_v12, %v444_v25 }
 0x109   :  { %v508_v32 = vadd.f32 %v492_v33, %v408_v23 }
 0x10a   :  { %v448_v48 = vpop.permute.xlu1 %447 }
 0x10b   :  { %v493_v37 = vmul.f32 %v1055_v12, %v448_v48  ;;  %v524_v27 = vmax.f32 %v508_v32, 0.0 }
 0x10d   :  { %v509_v49 = vadd.f32 %v493_v37, %v409_v62  ;;  %v137_v62 = vmul.f32 %v1034_v57, %v1014_v45  ;;  %v301_v37 = vmul.f32 %v1042_v61, %v1115_v16 }
 0x10f   :  { %v525_v41 = vmax.f32 %v509_v49, 0.0  ;;  %v96_v3 = vpop.permute.xlu1 %95 }
 0x110   :  { %v133_v55 = vmul.f32 %v1034_v57, %v96_v3 }
 0x111   :  { %v701_v52 = vpack.c.bf16 %v525_v41, %v524_v27 }
 0x113   :  { %702 = vmatpush3.bf16.msra.mxu0 %v701_v52 }
 0x114   :  { %v352_v54 = vpop.permute.xlu1 %351  ;;  %703 = vmatprep.subr.bf16.mxu0 %v805_v19 }
 0x115   :  { %v394_v53 = vmul.f32 %v1053_v11, %v352_v54 }
 0x117   :  { %v410_v39 = vadd.f32 %v394_v53, %v310_v38 }
 0x119   :  { %v180_v7 = vpop.permute.xlu1 %179 }
 0x11a   :  { %v212_v56 = vadd.f32 %v180_v7, %v132_v51 }
 0x11c   :  { %v312_v63 = vadd.f32 %v296_v36, %v212_v56 }
 0x11d   :  { %v184_v44 = vpop.permute.xlu1 %183 }
 0x11e   :  { %v412_v0 = vadd.f32 %v396_v58, %v312_v63  ;;  %v213_v15 = vadd.f32 %v184_v44, %v133_v55 }
 0x120   :  { %v512_v40 = vadd.f32 %v496_v21, %v412_v0  ;;  %v376_v21 = vpop.permute.xlu0 %375 }
 0x122   :  { %v264_v43 = vpop.permute.xlu1 %263  ;;  %v528_v26 = vmax.f32 %v512_v40, 0.0 }
 0x123   :  { %v297_v1 = vmul.f32 %v1042_v61, %v264_v43 }
 0x124   :  { %v480_v38 = vpop.permute.xlu0 %479 }
 0x125   :  { %v313_v29 = vadd.f32 %v297_v1, %v213_v15 }
 0x127   :  { %v452_v13 = vpop.permute.xlu1 %451 }
 0x128   :  { %v494_v5 = vmul.f32 %v1055_v12, %v452_v13 }
 0x12a   :  { %v510_v6 = vadd.f32 %v494_v5, %v410_v39 }
 0x12c   :  { %v526_v31 = vmax.f32 %v510_v6, 0.0  ;;  %v101_v17 = vpop.permute.xlu1 %100 }
 0x12d   :  { %v134_v3 = vmul.f32 %v1034_v57, %v101_v17 }
 0x12e   :  { %v704_v10 = vpack.c.bf16 %v527_v8, %v526_v31  ;;  %v400_v31 = vmul.f32 %v1053_v11, %v376_v21 }
 0x130   :  { %705 = vmatpush3.bf16.msra.mxu0 %v704_v10  ;;  %v106_v59 = vpop.permute.xlu1 %105 }
 0x131   :  { %706 = vmatprep.subr.bf16.mxu0 %v805_v19  ;;  %v135_v52 = vmul.f32 %v1034_v57, %v106_v59 }
 0x133   :  { %v215_v45 = vadd.f32 %v1040_v60, %v135_v52 }
 0x135   :  { %v364_v9 = vpop.permute.xlu1 %363 }
 0x136   :  { %v397_v22 = vmul.f32 %v1053_v11, %v364_v9 }
 0x138   :  { %v413_v35 = vadd.f32 %v397_v22, %v313_v29 }
 0x13a   :  { %v188_v42 = vpop.permute.xlu1 %187 }
 0x13b   :  { %v214_v51 = vadd.f32 %v188_v42, %v134_v3 }
 0x13f   :  { %v268_v46 = vpop.permute.xlu1 %267 }
 0x140   :  { %v298_v54 = vmul.f32 %v1042_v61, %v268_v46 }
 0x142   :  { %v314_v56 = vadd.f32 %v298_v54, %v214_v51 }
 0x143   :  { %v272_v14 = vpop.permute.xlu1 %271 }
 0x144   :  { %v299_v20 = vmul.f32 %v1042_v61, %v272_v14  ;;  %v611_v14 = vand.u32 127, %v118_v47 }
 0x146   :  { %v315_v63 = vadd.f32 %v299_v20, %v215_v45 }
 0x148   :  { %v464_v18 = vpop.permute.xlu1 %463 }
 0x149   :  { %v497_v25 = vmul.f32 %v1055_v12, %v464_v18 }
 0x14b   :  { %v513_v50 = vadd.f32 %v497_v25, %v413_v35 }
 0x14d   :  { %v529_v28 = vmax.f32 %v513_v50, 0.0  ;;  %v111_v33 = vpop.permute.xlu1 %110 }
 0x14e   :  { %v136_v30 = vmul.f32 %v1034_v57, %v111_v33  ;;  %v501_v57 = vmul.f32 %v1055_v12, %v480_v38 }
 0x14f   :  { %v707_v24 = vpack.c.bf16 %v529_v28, %v528_v26 }
 0x150   :  { %v216_v60 = vadd.f32 %v1046_v4, %v136_v30 }
 0x151   :  { %708 = vmatpush3.bf16.msra.mxu0 %v707_v24 }
 0x152   :  { %v368_v23 = vpop.permute.xlu1 %367  ;;  %709 = vmatprep.subr.bf16.mxu0 %v805_v19 }
 0x153   :  { %v398_v36 = vmul.f32 %v1053_v11, %v368_v23 }
 0x155   :  { %v414_v44 = vadd.f32 %v398_v36, %v314_v56 }
 0x156   :  { %v372_v48 = vpop.permute.xlu1 %371 }
 0x157   :  { %v399_v16 = vmul.f32 %v1053_v11, %v372_v48 }
 0x159   :  { %v415_v40 = vadd.f32 %v399_v16, %v315_v63 }
 0x15b   :  { %v200_v32 = vpop.permute.xlu1 %199 }
 0x15c   :  { %v217_v49 = vadd.f32 %v200_v32, %v137_v62 }
 0x15e   :  { %v317_v27 = vadd.f32 %v301_v37, %v217_v49 }
 0x160   :  { %v276_v41 = vpop.permute.xlu1 %275 }
 0x161   :  { %v300_v2 = vmul.f32 %v1042_v61, %v276_v41 }
 0x163   :  { %v316_v8 = vadd.f32 %v300_v2, %v216_v60 }
 0x165   :  { %v468_v7 = vpop.permute.xlu1 %467  ;;  %v416_v61 = vadd.f32 %v400_v31, %v316_v8 }
 0x166   :  { %v498_v58 = vmul.f32 %v1055_v12, %v468_v7 }
 0x168   :  { %v514_v34 = vadd.f32 %v498_v58, %v414_v44 }
 0x169   :  { %v472_v0 = vpop.permute.xlu1 %471 }
 0x16a   :  { %v499_v43 = vmul.f32 %v1055_v12, %v472_v0  ;;  %v530_v13 = vmax.f32 %v514_v34, 0.0 }
 0x16c   :  { %v515_v53 = vadd.f32 %v499_v43, %v415_v40 }
 0x16e   :  { %v531_v39 = vmax.f32 %v515_v53, 0.0  ;;  %v380_v5 = vpop.permute.xlu1 %379 }
 0x16f   :  { %v401_v6 = vmul.f32 %v1053_v11, %v380_v5  ;;  %v35_v11 = vld [vmem:[%s1200_s3] sm:$0xff]  ;;  %s808_s3 = smov [#allocation4]  }
 0x170   :  { %v710_v17 = vpack.c.bf16 %v531_v39, %v530_v13  ;;  %s631_s27 = sshll.u32 %s808_s3, 4  ;;  %s632_s27 = int_to_ptr.vmem [resolvable:$true] %s631_s27 }
 0x171   :  { %v417_v10 = vadd.f32 %v401_v6, %v317_v27  ;;  %p781_p1 = scmp.lt.s32.totalorder %s632_s27, %s632_s27 }
 0x172   :  { %711 = vmatpush3.bf16.msra.mxu0 %v710_v17 }
 0x173   :  { %v476_v59 = vpop.permute.xlu1 %475  ;;  %712 = vmatprep.subr.bf16.mxu0 %v805_v19  ;;  %v517_v9 = vadd.f32 %v501_v57, %v417_v10  ;;  %v612_v19 = vstv %s1197_s0  ;;  %s776_s0 = scalar_lea.vmem %s632_s27, 128 }
 0x174   :  { %v500_v4 = vmul.f32 %v1055_v12, %v476_v59  ;;  %vm613_vm1 = vcmp.lt.s32.totalorder %v611_v14, %v612_v19  ;;  %p777_p0 = scmp.ne.s32.totalorder %s632_s27, %s776_s0  ;;  %p782_p2 = scmp.lt.s32.totalorder %s776_s0, %s776_s0 }
 0x175   :  { %v533_v46 = vmax.f32 %v517_v9, 0.0 }
 0x176   :  { %v516_v42 = vadd.f32 %v500_v4, %v416_v61  ;;  %p783_p3 = por %p782_p2, %p781_p1 }
 0x178   :  { %v532_v55 = vmax.f32 %v516_v42, 0.0  ;;  %v537_v15 = vpop.permute.xlu1 %536  ;;  %p784_p4 = pnand %p783_p3, %p777_p0 }
 0x17a   :  { %v713_v1 = vpack.c.bf16 %v533_v46, %v532_v55 }
 0x17c   :  { %714 = vmatpush3.bf16.msra.mxu0 %v713_v1 }
 0x17f   :  { %689 = vmatmul.mubr.f32.vlgmr.msra.gmra.mrb[0].mxu0 %v35_v11 }
 0x252   :  { %v605_v22 = vpop.f32.mrb[0].mxu0 }
 0x253   :  { %v606_v12 = vadd.f32 %v605_v22, %v537_v15  ;;  %v690_v29 = vpop.f32.mrb[1].mxu0 }
 0x255   :  { %v614_v18 = vsel %vm613_vm1, %v606_v12, -inf }
 0x256   :  { %615 = vmax.xlane.f32.xlu1 %v614_v18 }
 0x2e3   :  { %v616_v35 = vpop.xlane.xlu1 %615 }
 0x2e4   :  { %v617_v25 = vsub.f32 %v614_v18, %v616_v35 }
 0x2e6   :  { %v618_v50 = vmul.f32 1.442695, %v617_v25 }
 0x2e8   :  { %772 = vpow2.f32 %v618_v50 }
 0x2f2   :  { %v773_v26 = vpop.eup %772 }
 0x2f3   :  { %620 = vadd.xlane.f32.xlu0 %v773_v26 }
 0x380   :  { %v621_v28 = vpop.xlane.xlu0 %620 }
 0x381   :  { %774 = vrcp.f32 %v621_v28 }
 0x38b   :  { %v775_v47 = vpop.eup %774 }
 0x38c   :  { %v623_v33 = vmul.f32 %v775_v47, %v773_v26 }
 0x38e   :  { %624 = vst [vmem:[#allocation4] sm:$0xff] %v623_v33 }
 0x38f   :  { %787 = shalt.err (!%p784_p4)
}
 0x390   :  { %s788_s30 = scalar_lea.hbm %s1201_s4, 128 }
 0x391   :  { %p789_p5 = scmp.ne.s32.totalorder %s1201_s4, %s788_s30  ;;  %p792_p6 = scmp.lt.u32.totalorder %s788_s30, %s1201_s4 }
 0x393   :  { %p794_p7 = pnand %p792_p6, %p789_p5 }
 0x395   :  { %797 = shalt.err (!%p794_p7)
}
 0x396   :  { %634 = dma.vmem_to_hbm [thread:$0]  %s632_s27, 128, %s1201_s4, [#allocation5]  }
 0x397   :  { %798 = dma.done.wait [#allocation5], 128  }
 0x398   :  { %799 = vsyncadd [#allocation5], 4294967168 }
 0x399   :  { %638 = vsyncpa [#allocation5], 1 }

</bundles_post_ra>
